<compile_context>
chip_gen: v5e
topology: v5e:2x2
jax: 0.10.0
libtpu: 0.0.40
codegen_flags: <defaults>
</compile_context>

<pallas_src>
import functools

import jax
import jax.numpy as jnp
import numpy as np
from jax.experimental import pallas as pl
from jax.experimental.pallas import tpu as pltpu


def _focal_loss_kernel(x_ref, t_ref, out_ref, acc_ref, *, gamma, hw, sub_tile,
                       tiles_per_split, n_clean_tiles, need_mask, acc_rows):
    """One grid step: one (split, batch) pair, `sub_tile * 128` pixels.

    x_ref  : (1, C, sub_tile, 128) logits (native dtype, cast per class slice)
    t_ref  : (1, sub_tile, 128)    int8/int16/int32 targets
    out_ref: (1, 1, 1, 128)        per-(split,batch) per-lane partial sums
    acc_ref: (acc_rows, 128)       f32 accumulator, persists across pixel tiles
    """
    j = pl.program_id(2)
    tid = pl.program_id(0) * tiles_per_split + j          # global pixel-tile index

    @pl.when(j == 0)
    def _init():
        acc_ref[...] = jnp.zeros_like(acc_ref)

    num_classes = x_ref.shape[1]
    t = t_ref[0].astype(jnp.int32)                        # (S, 128)

    # ---- pass 1 over classes: running max + target-class logit.
    # Class slices are consumed one at a time, so no (C,S,128) f32 temporaries
    # (astype copy / iota / where mask of the unfused version) are materialized.
    x0 = x_ref[0, 0].astype(jnp.float32)                  # (S, 128)
    m = x0
    x_t = jnp.where(t == 0, x0, 0.0)
    for c in range(1, num_classes):
        xc = x_ref[0, c].astype(jnp.float32)
        m = jnp.maximum(m, xc)
        x_t = jnp.where(t == c, xc, x_t)

    # ---- pass 2 over classes: softmax denominator (and sum exp^2 for gamma==2).
    gamma_is_two = float(gamma) == 2.0
    s = jnp.zeros_like(m)
    sum_ex2 = jnp.zeros_like(m) if gamma_is_two else None
    for c in range(num_classes):
        ex = jnp.exp(x_ref[0, c].astype(jnp.float32) - m)
        s = s + ex
        if gamma_is_two:
            sum_ex2 = sum_ex2 + ex * ex

    # Exact reciprocal: approx=True would save one EUP op but its ~1e-4
    # relative error in the focal weight is visible against an f32 reference;
    # the kernel is HBM-bound so the exact form costs nothing here.
    inv_s = pl.reciprocal(s, approx=False)

    # ce = -log p_t = (m - x_t) + log(sum_c exp(x_c - m))
    ce = (m - x_t) + jnp.log(s)

    if gamma_is_two:
        # sum_c (1-p_c)^2 = C - 2*sum_c p_c + sum_c p_c^2 = (C - 2) + sum_c p_c^2
        wsum = (float(num_classes) - 2.0) + sum_ex2 * (inv_s * inv_s)
    else:
        # pass 3 (general gamma); integer gamma uses repeated multiplies so
        # only the mandatory exp hits the EUP (no exp+log pair per logit).
        g_int = int(gamma) if float(gamma).is_integer() and gamma >= 0 else None
        wsum = jnp.zeros_like(m)
        for c in range(num_classes):
            omp = 1.0 - jnp.exp(x_ref[0, c].astype(jnp.float32) - m) * inv_s
            if g_int is not None and g_int <= 8:
                w = jnp.ones_like(omp)
                for _ in range(g_int):
                    w = w * omp
            else:
                w = jnp.power(omp, float(gamma))
            wsum = wsum + w

    contrib = ce * wsum                                   # (S, 128)

    def _accumulate(vals):
        # Fold (S,128) -> (acc_rows,128) with vreg-wise adds (no relayout):
        # keeps the persistent accumulator tiny and off the vector-store slot.
        acc_ref[...] += vals.reshape(-1, acc_rows, 128).sum(axis=0)

    if need_mask:
        # Only tiles past the last fully-valid tile contain padded / ragged /
        # overhang pixels, so the iota+compare+select is paid only there.
        # jnp.where (select, not multiply) keeps Inf/NaN from garbage out.
        @pl.when(tid < n_clean_tiles)
        def _acc_clean():
            _accumulate(contrib)

        @pl.when(tid >= n_clean_tiles)
        def _acc_masked():
            row = jax.lax.broadcasted_iota(jnp.int32, contrib.shape, 0)
            lane = jax.lax.broadcasted_iota(jnp.int32, contrib.shape, 1)
            pix = (tid * sub_tile + row) * 128 + lane
            _accumulate(jnp.where(pix < hw, contrib, 0.0))
    else:
        _accumulate(contrib)

    @pl.when(j == pl.num_programs(2) - 1)
    def _finalize():
        out_ref[...] = jnp.sum(acc_ref[...], axis=0).reshape(1, 1, 1, 128)


def focal_loss(inputs, target, *, gamma=2, reduction="mean",
               block_bytes=4 * 1024 * 1024, vmem_limit_bytes=None):
    """Pallas FocalLoss forward (reduction='mean'/'sum').

    inputs: (N, C, H, W) float logits (PyTorch NCHW; f32 or bf16 — bf16 streams
            at half the HBM bytes and is cast to f32 per class slice in VMEM).
    target: (N, H, W)    integer class indices in [0, C).
    block_bytes: approx bytes of logits per grid step; ~4 MiB is a safe default
            for v5e/v6e, raise to ~8 MiB on v7x.
    """
    N, C, H, W = inputs.shape
    HW = H * W
    itemsize = jnp.dtype(inputs.dtype).itemsize

    # ---- pixels packed as rows of 128 lanes.
    rows = pl.cdiv(HW, 128)
    hw_pad = rows * 128
    need_pix_pad = hw_pad != HW

    # ---- tile sizing.  Either the whole image fits in one block
    # (sub_tile == rows, full-dim block) or sub_tile is a multiple of 32 and
    # ragged / overhang tiles are masked in-kernel — no host-side jnp.pad just
    # because sub_tile does not divide the row count.
    bytes_per_row = C * 128 * itemsize
    max_sub = max(32, (block_bytes // bytes_per_row) // 32 * 32)
    if rows <= max_sub:
        sub_tile = rows
        n_tiles = 1
    else:
        sub_tile = max_sub
        n_tiles = pl.cdiv(rows, sub_tile)

    # ---- split the pixel-tile range so both TensorCores (v7x) get work when
    # N is 1 / odd; on single-TC chips it is just an outer loop of length 2.
    n_splits = 2 if (N % 2 == 1 and n_tiles >= 2) else 1
    tiles_per_split = pl.cdiv(n_tiles, n_splits)

    n_clean_tiles = HW // (sub_tile * 128)          # tiles with only valid pixels
    need_mask = n_clean_tiles < n_splits * tiles_per_split
    acc_rows = 8 if sub_tile % 8 == 0 else sub_tile

    # ---- free NCHW reshapes; narrow targets to cut their HBM traffic.
    if C <= 127:
        t_dtype = jnp.int8
    elif C <= 32767:
        t_dtype = jnp.int16
    else:
        t_dtype = jnp.int32
    x = inputs.reshape(N, C, HW)
    t = target.reshape(N, HW).astype(t_dtype)
    if need_pix_pad:
        # TODO(synk): this full copy only triggers when H*W % 128 != 0 (rare
        # for segmentation shapes); the common path streams logits untouched.
        x = jnp.pad(x, ((0, 0), (0, 0), (0, hw_pad - HW)))
        t = jnp.pad(t, ((0, 0), (0, hw_pad - HW)))
    x = x.reshape(N, C, rows, 128)
    t = t.reshape(N, rows, 128)

    last_tile = n_tiles - 1

    def x_map(sp, b, j):
        # Clamp so a fully-out-of-range overhang tile (odd n_tiles split)
        # re-fetches the last valid tile; its contribution is masked to zero.
        return (b, 0, jnp.minimum(sp * tiles_per_split + j, last_tile), 0)

    def t_map(sp, b, j):
        return (b, jnp.minimum(sp * tiles_per_split + j, last_tile), 0)

    kernel = functools.partial(
        _focal_loss_kernel, gamma=gamma, hw=HW, sub_tile=sub_tile,
        tiles_per_split=tiles_per_split, n_clean_tiles=n_clean_tiles,
        need_mask=need_mask, acc_rows=acc_rows)

    if vmem_limit_bytes is None:
        in_block = C * sub_tile * 128 * itemsize
        t_block = sub_tile * 128 * jnp.dtype(t_dtype).itemsize
        temp_bytes = 16 * sub_tile * 128 * 4        # fused-loop live f32 temps (generous)
        vmem_limit_bytes = int(min(48 * 1024 * 1024,
                                   max(16 * 1024 * 1024,
                                       2 * (in_block + t_block) + temp_bytes
                                       + 4 * 1024 * 1024)))

    partial_sums = pl.pallas_call(
        kernel,
        out_shape=jax.ShapeDtypeStruct((n_splits, N, 1, 128), jnp.float32),
        grid_spec=pltpu.PrefetchScalarGridSpec(
            num_scalar_prefetch=0,
            grid=(n_splits, N, tiles_per_split),
            in_specs=[
                pl.BlockSpec((1, C, sub_tile, 128), x_map),
                pl.BlockSpec((1, sub_tile, 128), t_map),
            ],
            out_specs=pl.BlockSpec((1, 1, 1, 128), lambda sp, b, j: (sp, b, 0, 0)),
            scratch_shapes=[pltpu.VMEM((acc_rows, 128), jnp.float32)],
        ),
        compiler_params=pltpu.CompilerParams(
            dimension_semantics=("parallel", "parallel", "arbitrary"),
            vmem_limit_bytes=vmem_limit_bytes,
        ),
    )(x, t)

    total = jnp.sum(partial_sums)
    if reduction == "mean":
        return total / (N * C * H * W)
    elif reduction == "sum":
        return total
    else:
        # TODO(synk): reduction='none' returns the full (N,C,H,W) map; this
        # scalar-reduction kernel implements only 'mean' and 'sum'.
        raise NotImplementedError("reduction='none' not implemented")


def focal_loss_ref(inputs, target, gamma=2):
    """Pure-JAX reference matching the PyTorch forward (reduction='mean')."""
    x = inputs.astype(jnp.float32)
    p = jax.nn.softmax(x, axis=1)
    logp = jax.nn.log_softmax(x, axis=1)
    ce = -jnp.take_along_axis(logp, target[:, None].astype(jnp.int32), axis=1)[:, 0]
    fw = (1.0 - p) ** gamma
    return jnp.mean(fw * ce[:, None])


if __name__ == "__main__":
    key = jax.random.PRNGKey(0)
    ks = jax.random.split(key, 8)

    # Case 1: H*W multiple of 128 -> no padding, no masking, whole-image block.
    N, C, H, W = 2, 4, 16, 16
    x = jax.random.normal(ks[0], (N, C, H, W), dtype=jnp.float32)
    t = jax.random.randint(ks[1], (N, H, W), 0, C, dtype=jnp.int32)
    out = jax.block_until_ready(focal_loss(x, t, gamma=2, reduction="mean"))
    ref = jax.block_until_ready(focal_loss_ref(x, t, gamma=2))
    np.testing.assert_allclose(np.asarray(out), np.asarray(ref), rtol=1e-5, atol=1e-6)

    # Case 2: H*W not a multiple of 128 -> pixel pad + in-kernel mask.
    N2, C2, H2, W2 = 2, 5, 9, 13
    x2 = jax.random.normal(ks[2], (N2, C2, H2, W2), dtype=jnp.float32)
    t2 = jax.random.randint(ks[3], (N2, H2, W2), 0, C2, dtype=jnp.int32)
    out2 = jax.block_until_ready(focal_loss(x2, t2, gamma=2, reduction="mean"))
    ref2 = jax.block_until_ready(focal_loss_ref(x2, t2, gamma=2))
    np.testing.assert_allclose(np.asarray(out2), np.asarray(ref2), rtol=1e-5, atol=1e-6)

    # Case 3: N=1 with a forced small block -> multi-tile grid, dual-TC split,
    # ragged last tile and a clamped fully-masked overhang tile.
    N3, C3, H3, W3 = 1, 4, 96, 96
    x3 = jax.random.normal(ks[4], (N3, C3, H3, W3), dtype=jnp.float32)
    t3 = jax.random.randint(ks[5], (N3, H3, W3), 0, C3, dtype=jnp.int32)
    out3 = jax.block_until_ready(focal_loss(x3, t3, block_bytes=64 * 1024))
    ref3 = jax.block_until_ready(focal_loss_ref(x3, t3))
    np.testing.assert_allclose(np.asarray(out3), np.asarray(ref3), rtol=1e-5, atol=1e-6)

    # Case 4: bf16 logit streaming (per-class-slice f32 cast happens in VMEM).
    x4 = x3.astype(jnp.bfloat16)
    out4 = jax.block_until_ready(focal_loss(x4, t3, block_bytes=64 * 1024))
    ref4 = jax.block_until_ready(focal_loss_ref(x4, t3))
    np.testing.assert_allclose(np.asarray(out4), np.asarray(ref4), rtol=2e-2, atol=1e-3)

    print("KERNEL_OK")
</pallas_src>

<mosaic_0001>
module attributes {stable_mosaic.version = 11 : i64} {
  func.func @_focal_loss_kernel(%arg0: i32, %arg1: i32, %arg2: i32, %arg3: memref<1x4x2x128xf32, #tpu.memory_space<vmem>>, %arg4: memref<1x2x128xi8, #tpu.memory_space<vmem>>, %arg5: memref<1x1x1x128xf32, #tpu.memory_space<vmem>>, %arg6: memref<2x128xf32, #tpu.memory_space<vmem>>) attributes {dimension_semantics = [#tpu.dimension_semantics<parallel>, #tpu.dimension_semantics<parallel>, #tpu.dimension_semantics<arbitrary>], iteration_bounds = array<i64: 1, 2, 1>, scalar_prefetch = 0 : i64, scratch_operands = 1 : i64, tpu.core_type = #tpu.core_type<tc>, window_params = [{transform_indices = @transform_0, window_bounds = array<i64: 1, 4, 2, 128>}, {transform_indices = @transform_1, window_bounds = array<i64: 1, 2, 128>}, {transform_indices = @transform_2, window_bounds = array<i64: 1, 1, 1, 128>}]} {
    %c0_i32 = arith.constant 0 : i32
    %0 = arith.cmpi eq, %arg2, %c0_i32 : i32
    %1 = arith.extui %0 : i1 to i32
    %c0_i32_0 = arith.constant 0 : i32
    %2 = arith.cmpi ne, %1, %c0_i32_0 : i32
    scf.if %2 {
      %cst_43 = arith.constant 0.000000e+00 : f32
      %77 = vector.broadcast %cst_43 : f32 to vector<2x128xf32>
      %c0_44 = arith.constant 0 : index
      %c0_45 = arith.constant 0 : index
      %78 = vector.load %arg6[%c0_44, %c0_45] : memref<2x128xf32, #tpu.memory_space<vmem>>, vector<2x128xf32>
      tpu.vector_store %arg6[%c0_44, %c0_45], %77 {strides = array<i32>} : memref<2x128xf32, #tpu.memory_space<vmem>>, vector<2x128xf32>,
    } else {
    }
    %c0 = arith.constant 0 : index
    %c0_1 = arith.constant 0 : index
    %c0_2 = arith.constant 0 : index
    %3 = vector.load %arg4[%c0, %c0_1, %c0_2] : memref<1x2x128xi8, #tpu.memory_space<vmem>>, vector<1x2x128xi8>
    %4 = vector.shape_cast %3 : vector<1x2x128xi8> to vector<2x128xi8>
    %5 = arith.extsi %4 : vector<2x128xi8> to vector<2x128xi32>
    %c0_3 = arith.constant 0 : index
    %c0_4 = arith.constant 0 : index
    %c0_5 = arith.constant 0 : index
    %c0_6 = arith.constant 0 : index
    %6 = vector.load %arg3[%c0_3, %c0_4, %c0_5, %c0_6] : memref<1x4x2x128xf32, #tpu.memory_space<vmem>>, vector<1x1x2x128xf32>
    %7 = vector.shape_cast %6 : vector<1x1x2x128xf32> to vector<2x128xf32>
    %c0_i32_7 = arith.constant 0 : i32
    %8 = vector.broadcast %c0_i32_7 : i32 to vector<2x128xi32>
    %9 = arith.cmpi eq, %5, %8 : vector<2x128xi32>
    %cst = arith.constant 0.000000e+00 : f32
    %10 = vector.broadcast %cst : f32 to vector<2x128xf32>
    %11 = arith.select %9, %7, %10 : vector<2x128xi1>, vector<2x128xf32>
    %c0_8 = arith.constant 0 : index
    %c1 = arith.constant 1 : index
    %c0_9 = arith.constant 0 : index
    %c0_10 = arith.constant 0 : index
    %12 = vector.load %arg3[%c0_8, %c1, %c0_9, %c0_10] : memref<1x4x2x128xf32, #tpu.memory_space<vmem>>, vector<1x1x2x128xf32>
    %13 = vector.shape_cast %12 : vector<1x1x2x128xf32> to vector<2x128xf32>
    %14 = arith.maximumf %7, %13 : vector<2x128xf32>
    %c1_i32 = arith.constant 1 : i32
    %15 = vector.broadcast %c1_i32 : i32 to vector<2x128xi32>
    %16 = arith.cmpi eq, %5, %15 : vector<2x128xi32>
    %17 = arith.select %16, %13, %11 : vector<2x128xi1>, vector<2x128xf32>
    %c0_11 = arith.constant 0 : index
    %c2 = arith.constant 2 : index
    %c0_12 = arith.constant 0 : index
    %c0_13 = arith.constant 0 : index
    %18 = vector.load %arg3[%c0_11, %c2, %c0_12, %c0_13] : memref<1x4x2x128xf32, #tpu.memory_space<vmem>>, vector<1x1x2x128xf32>
    %19 = vector.shape_cast %18 : vector<1x1x2x128xf32> to vector<2x128xf32>
    %20 = arith.maximumf %14, %19 : vector<2x128xf32>
    %c2_i32 = arith.constant 2 : i32
    %21 = vector.broadcast %c2_i32 : i32 to vector<2x128xi32>
    %22 = arith.cmpi eq, %5, %21 : vector<2x128xi32>
    %23 = arith.select %22, %19, %17 : vector<2x128xi1>, vector<2x128xf32>
    %c0_14 = arith.constant 0 : index
    %c3 = arith.constant 3 : index
    %c0_15 = arith.constant 0 : index
    %c0_16 = arith.constant 0 : index
    %24 = vector.load %arg3[%c0_14, %c3, %c0_15, %c0_16] : memref<1x4x2x128xf32, #tpu.memory_space<vmem>>, vector<1x1x2x128xf32>
    %25 = vector.shape_cast %24 : vector<1x1x2x128xf32> to vector<2x128xf32>
    %26 = arith.maximumf %20, %25 : vector<2x128xf32>
    %c3_i32 = arith.constant 3 : i32
    %27 = vector.broadcast %c3_i32 : i32 to vector<2x128xi32>
    %28 = arith.cmpi eq, %5, %27 : vector<2x128xi32>
    %29 = arith.select %28, %25, %23 : vector<2x128xi1>, vector<2x128xf32>
    %cst_17 = arith.constant 0.000000e+00 : f32
    %30 = vector.broadcast %cst_17 : f32 to vector<2x128xf32>
    %cst_18 = arith.constant 0.000000e+00 : f32
    %31 = vector.broadcast %cst_18 : f32 to vector<2x128xf32>
    %c0_19 = arith.constant 0 : index
    %c0_20 = arith.constant 0 : index
    %c0_21 = arith.constant 0 : index
    %c0_22 = arith.constant 0 : index
    %32 = vector.load %arg3[%c0_19, %c0_20, %c0_21, %c0_22] : memref<1x4x2x128xf32, #tpu.memory_space<vmem>>, vector<1x1x2x128xf32>
    %33 = vector.shape_cast %32 : vector<1x1x2x128xf32> to vector<2x128xf32>
    %34 = arith.subf %33, %26 : vector<2x128xf32>
    %35 = math.exp %34 : vector<2x128xf32>
    %36 = arith.addf %30, %35 : vector<2x128xf32>
    %37 = arith.mulf %35, %35 : vector<2x128xf32>
    %38 = arith.addf %31, %37 : vector<2x128xf32>
    %c0_23 = arith.constant 0 : index
    %c1_24 = arith.constant 1 : index
    %c0_25 = arith.constant 0 : index
    %c0_26 = arith.constant 0 : index
    %39 = vector.load %arg3[%c0_23, %c1_24, %c0_25, %c0_26] : memref<1x4x2x128xf32, #tpu.memory_space<vmem>>, vector<1x1x2x128xf32>
    %40 = vector.shape_cast %39 : vector<1x1x2x128xf32> to vector<2x128xf32>
    %41 = arith.subf %40, %26 : vector<2x128xf32>
    %42 = math.exp %41 : vector<2x128xf32>
    %43 = arith.addf %36, %42 : vector<2x128xf32>
    %44 = arith.mulf %42, %42 : vector<2x128xf32>
    %45 = arith.addf %38, %44 : vector<2x128xf32>
    %c0_27 = arith.constant 0 : index
    %c2_28 = arith.constant 2 : index
    %c0_29 = arith.constant 0 : index
    %c0_30 = arith.constant 0 : index
    %46 = vector.load %arg3[%c0_27, %c2_28, %c0_29, %c0_30] : memref<1x4x2x128xf32, #tpu.memory_space<vmem>>, vector<1x1x2x128xf32>
    %47 = vector.shape_cast %46 : vector<1x1x2x128xf32> to vector<2x128xf32>
    %48 = arith.subf %47, %26 : vector<2x128xf32>
    %49 = math.exp %48 : vector<2x128xf32>
    %50 = arith.addf %43, %49 : vector<2x128xf32>
    %51 = arith.mulf %49, %49 : vector<2x128xf32>
    %52 = arith.addf %45, %51 : vector<2x128xf32>
    %c0_31 = arith.constant 0 : index
    %c3_32 = arith.constant 3 : index
    %c0_33 = arith.constant 0 : index
    %c0_34 = arith.constant 0 : index
    %53 = vector.load %arg3[%c0_31, %c3_32, %c0_33, %c0_34] : memref<1x4x2x128xf32, #tpu.memory_space<vmem>>, vector<1x1x2x128xf32>
    %54 = vector.shape_cast %53 : vector<1x1x2x128xf32> to vector<2x128xf32>
    %55 = arith.subf %54, %26 : vector<2x128xf32>
    %56 = math.exp %55 : vector<2x128xf32>
    %57 = arith.addf %50, %56 : vector<2x128xf32>
    %58 = arith.mulf %56, %56 : vector<2x128xf32>
    %59 = arith.addf %52, %58 : vector<2x128xf32>
    %60 = tpu.reciprocal %57 : vector<2x128xf32> -> vector<2x128xf32>
    %61 = arith.subf %26, %29 : vector<2x128xf32>
    %62 = math.log %57 : vector<2x128xf32>
    %63 = arith.addf %61, %62 : vector<2x128xf32>
    %64 = arith.mulf %60, %60 : vector<2x128xf32>
    %65 = arith.mulf %59, %64 : vector<2x128xf32>
    %cst_35 = arith.constant 2.000000e+00 : f32
    %66 = vector.broadcast %cst_35 : f32 to vector<2x128xf32>
    %67 = arith.addf %66, %65 : vector<2x128xf32>
    %68 = arith.mulf %63, %67 : vector<2x128xf32>
    %c0_36 = arith.constant 0 : index
    %c0_37 = arith.constant 0 : index
    %69 = vector.load %arg6[%c0_36, %c0_37] : memref<2x128xf32, #tpu.memory_space<vmem>>, vector<2x128xf32>
    %70 = vector.shape_cast %68 : vector<2x128xf32> to vector<1x2x128xf32>
    %cst_38 = arith.constant dense<0.000000e+00> : vector<2x128xf32>
    %71 = vector.multi_reduction <add>, %70, %cst_38 [0] : vector<1x2x128xf32> to vector<2x128xf32>
    %72 = arith.addf %69, %71 : vector<2x128xf32>
    %c0_39 = arith.constant 0 : index
    %c0_40 = arith.constant 0 : index
    %73 = vector.load %arg6[%c0_39, %c0_40] : memref<2x128xf32, #tpu.memory_space<vmem>>, vector<2x128xf32>
    tpu.vector_store %arg6[%c0_39, %c0_40], %72 {strides = array<i32>} : memref<2x128xf32, #tpu.memory_space<vmem>>, vector<2x128xf32>,
    %c0_i32_41 = arith.constant 0 : i32
    %74 = arith.cmpi eq, %arg2, %c0_i32_41 : i32
    %75 = arith.extui %74 : i1 to i32
    %c0_i32_42 = arith.constant 0 : i32
    %76 = arith.cmpi ne, %75, %c0_i32_42 : i32
    scf.if %76 {
      %c0_43 = arith.constant 0 : index
      %c0_44 = arith.constant 0 : index
      %77 = vector.load %arg6[%c0_43, %c0_44] : memref<2x128xf32, #tpu.memory_space<vmem>>, vector<2x128xf32>
      %cst_45 = arith.constant dense<0.000000e+00> : vector<128xf32>
      %78 = vector.multi_reduction <add>, %77, %cst_45 [0] : vector<2x128xf32> to vector<128xf32>
      %79 = vector.shape_cast %78 : vector<128xf32> to vector<1x1x1x128xf32>
      %c0_46 = arith.constant 0 : index
      %c0_47 = arith.constant 0 : index
      %c0_48 = arith.constant 0 : index
      %c0_49 = arith.constant 0 : index
      %80 = vector.load %arg5[%c0_46, %c0_47, %c0_48, %c0_49] : memref<1x1x1x128xf32, #tpu.memory_space<vmem>>, vector<1x1x1x128xf32>
      tpu.vector_store %arg5[%c0_46, %c0_47, %c0_48, %c0_49], %79 {strides = array<i32>} : memref<1x1x1x128xf32, #tpu.memory_space<vmem>>, vector<1x1x1x128xf32>,
    } else {
    }
    return
  }
  func.func @transform_0(%arg0: i32, %arg1: i32, %arg2: i32) -> (i32, i32, i32, i32) {
    %c1_i32 = arith.constant 1 : i32
    %0 = arith.muli %arg0, %c1_i32 : i32
    %1 = arith.addi %0, %arg2 : i32
    %c0_i32 = arith.constant 0 : i32
    %2 = arith.minsi %1, %c0_i32 : i32
    %c0_i32_0 = arith.constant 0 : i32
    %c0_i32_1 = arith.constant 0 : i32
    %c0_i32_2 = arith.constant 0 : i32
    return %arg1, %c0_i32_0, %2, %c0_i32_1 : i32, i32, i32, i32
  }
  func.func @transform_1(%arg0: i32, %arg1: i32, %arg2: i32) -> (i32, i32, i32) {
    %c1_i32 = arith.constant 1 : i32
    %0 = arith.muli %arg0, %c1_i32 : i32
    %1 = arith.addi %0, %arg2 : i32
    %c0_i32 = arith.constant 0 : i32
    %2 = arith.minsi %1, %c0_i32 : i32
    %c0_i32_0 = arith.constant 0 : i32
    %c0_i32_1 = arith.constant 0 : i32
    return %arg1, %2, %c0_i32_0 : i32, i32, i32
  }
  func.func @transform_2(%arg0: i32, %arg1: i32, %arg2: i32) -> (i32, i32, i32, i32) {
    %c0_i32 = arith.constant 0 : i32
    %c0_i32_0 = arith.constant 0 : i32
    %c0_i32_1 = arith.constant 0 : i32
    return %arg0, %arg1, %c0_i32, %c0_i32_0 : i32, i32, i32, i32
  }
}

</mosaic_0001>

<bundles_post_ra>
// kernel: tpu_custom_call.1
= control target key start
LH: loop header
LB: loop body
LE: loop exit
PB: predicated region body
PF: predicated region fallthrough
CT: control target
= control target key end

     0   :  { %7 = vsyncpa [#allocation4], 0  ;;  %s855_s0 = inlined_call_operand.hbm [shape: f32[2,4,2,128], index: 0, kind: input, shape index: {}]   ;;  %s856_s1 = inlined_call_operand.hbm [shape: s8[2,2,128], index: 1, kind: input, shape index: {}]   ;;  %s857_s2 = inlined_call_operand.hbm [shape: f32[1,2,1,128], index: 2, kind: output, shape index: {}]  }
   0x1   :  { %9 = vsyncpa [#allocation4 + $0x1], 0 }
   0x2   :  { %10 = vsyncpa [#allocation7], 0 }
   0x3   :  { %12 = vsyncpa [#allocation7 + $0x1], 0 }
   0x4   :  { %13 = vsyncpa [#allocation5], 0 }
   0x5   :  { %15 = vsyncpa [#allocation5 + $0x1], 0  ;;  %s716_s9 = smov 0   ;;  %s718_s10 = smov 0  }
   0x6   :  { %s720_s11 = smov 0   ;;  %s722_s12 = smov 0  }
   0x7   :  { %s724_s13 = smov 0   ;;  %s726_s14 = smov 0  }
   0x8 LB: > { %s453_s15 = sadd.s32 4294967295, %s696_s14   ;;  %s454_s16 = sadd.s32 4294967294, %s696_s14   ;;  %s696_s14 = sphi %s726_s14, %s21_s14   ;;  %s692_s13 = sphi %s724_s13, %s867_s13   ;;  %s688_s12 = sphi %s722_s12, %s866_s12   ;;  %s684_s11 = sphi %s720_s11, %s865_s11   ;;  %s680_s10 = sphi %s718_s10, %s864_s10   ;;  %s676_s9 = sphi %s716_s9, %s863_s9  }
   0x9   : > { %s36_s17 = sadd.s32 1, %s692_s13  ;;  %s55_s18 = sadd.s32 1, %s684_s11 }
   0xa   : > { %p38_p0 = scmp.ge.s32.totalorder %s36_s17, 2  ;;  %p62_p1 = scmp.ne.s32.totalorder %s684_s11, %s680_s10 }
   0xb   : > { %p63_p2 = scmp.eq.s32.totalorder %s696_s14, 0  ;;  %p68_p3 = scmp.ne.s32.totalorder %s680_s10, %s676_s9 }
   0xc   : > { %s869_s17 = smov (%p38_p0, %s36_s17), 0  ;;  %p69_p5 = scmp.eq.s32.totalorder %s453_s15, 0 }
   0xd   : > { %p757_p4 = por %p63_p2, %p62_p1  ;;  %s50_s20 = ssub.s32 %s692_s13, %s869_s17 }
   0xe   : > { %p128_p6 = scmp.eq.s32.totalorder %s453_s15, 1  ;;  %p53_p7 = scmp.eq.s32.totalorder %s50_s20, 0 }
   0xf   : > { %p763_p8 = por %p69_p5, %p68_p3  ;;  %p134_p10 = scmp.eq.s32.totalorder %s454_s16, 1 }
  0x10   : > { %p767_p9 = por %p128_p6, %p62_p1  ;;  %p456_p12 = scmp.ge.s32.totalorder %s696_s14, 2 }
  0x11   : > { %s772_s23 = scalar_select %p53_p7, %s684_s11, %s55_s18  }
  0x12   : > { %p774_p11 = por %p134_p10, %p68_p3  ;;  %p485_p13 = scmp.lt.s32.totalorder %s696_s14, 2 }
  0x13   : > { %s154_s25 = sand.u32 1, %s684_s11   ;;  %s467_s27 = sshll.u32 %s692_s13, 3 }
  0x14   : > { %s457_s26 = sshll.u32 %s154_s25, 3  ;;  %s167_s30 = scalar_lea.hbm %s855_s0, %s467_s27 }
  0x15   : > { %s158_s3 = scalar_lea.vmem [#allocation3], %s457_s26  ;;  %s168_s5 = sshll.u32 %s167_s30, 4  ;;  %s169_s5 = int_to_ptr.hbm [resolvable:$true] %s168_s5 }
  0x16   : > { %s170_s4 = sshll.u32 %s158_s3, 4  ;;  %p787_p0 = pnand %p485_p13, %p757_p4  ;;  %s171_s4 = int_to_ptr.vmem [resolvable:$true] %s170_s4 }
  0x17   : > { %p460_p1 = scmp.ge.s32.totalorder %s696_s14, 1  ;;  %s155_s7 = scalar_lea.sflag [#allocation4], %s154_s25 }
  0x18   : > { %s698_s8 = smov 32   ;;  %s699_s15 = smov 2  }
  0x19   : > { %477 = dma.hbm_to_vmem [thread:$0]  (!%p787_p0), %s169_s5, 128, %s171_s4, %s155_s7, %s698_s8, %s698_s8, %s699_s15  }
  0x1a   : > { %p199_p2 = scmp.lt.s32.totalorder %s696_s14, 3  ;;  %s190_s20 = scalar_lea.hbm %s856_s1, %s692_s13 }
  0x1b   : > { %s192_s26 = sshll.u32 %s190_s20, 4  ;;  %s183_s19 = scalar_lea.vmem [#allocation6], %s154_s25  ;;  %s193_s26 = int_to_ptr.hbm [resolvable:$true] %s192_s26 }
  0x1c   : > { %p200_p3 = pnand %p460_p1, %p199_p2  ;;  %s194_s27 = sshll.u32 %s183_s19, 4  ;;  %s195_s27 = int_to_ptr.vmem [resolvable:$true] %s194_s27 }
  0x1d   : > { %s181_s28 = scalar_lea.sflag [#allocation7], %s154_s25  ;;  %s802_s29 = sand.u32 (!%p200_p3), 1, %s680_s10  }
  0x1e   : > { %480 = dma.hbm_to_vmem [thread:$0]  (!%p787_p0), %s193_s26, 16, %s195_s27, %s181_s28  }
  0x1f   : > { %203 = sbr.rel (%p200_p3) target bundleno = 115 (0x73), region = 28  ;;  %s461_s30 = sshll.u32 (!%p200_p3), %s802_s29, 3 }
  0x20   : > { %s206_s3 = scalar_lea.sflag (!%p200_p3), [#allocation4], %s802_s29  ;;  %s209_s4 = scalar_lea.vmem (!%p200_p3), [#allocation3], %s461_s30 }
  0x24   : > { %663 = dma.done.wait (%p763_p8), %s206_s3, 128  }
  0x25   : > { %665 = vsyncadd (%p763_p8), %s206_s3, 4294967168  ;;  %s216_s25 = scalar_lea.sflag [#allocation7], %s802_s29  ;;  %s218_s5 = scalar_lea.vmem [#allocation6], %s802_s29 }
  0x26   : > { %667 = dma.done.wait (%p763_p8), %s216_s25, 16  }
  0x27   : > { %669 = vsyncadd (%p763_p8), %s216_s25, 4294967280  ;;  %v700_v0 = vmov 0.0   ;;  %v256_v1 = vld [vmem:[%s209_s4] sm:$0x3]  ;;  %v462_v2 = vld [vmem:[%s209_s4 + $0x2] sm:$0x3]  ;;  %s348_s7 = scalar_lea.hbm %s857_s2, %s688_s12 }
  0x28   : > { %253 = vst [vmem:[#allocation2] sm:$0x3] %v700_v0  ;;  %v261_v3 = vmax.f32 %v256_v1, %v462_v2  ;;  %v463_v4 = vld [vmem:[%s209_s4 + $0x4] sm:$0x3]  ;;  %v464_v5 = vld [vmem:[%s209_s4 + $0x6] sm:$0x3] }
  0x29   : > { %v254_v17 = vld [vmem:[%s218_s5] sm:$0x1]  ;;  %vm328_vm8 = vcmask 1041408   ;;  %s242_s8 = scalar_lea.vmem [#allocation8], %s802_s29  ;;  %s352_s16 = sshll.u32 %s348_s7, 4  ;;  %s353_s16 = int_to_ptr.hbm [resolvable:$true] %s352_s16 }
  0x2a   : > { %v266_v6 = vmax.f32 %v261_v3, %v463_v4  ;;  %v255_v22 = vunpack.c.0.s8 %v254_v17  ;;  %s350_s15 = sshll.u32 %s242_s8, 4  ;;  %s338_s18 = scalar_lea.sflag [#allocation5], %s802_s29  ;;  %s351_s15 = int_to_ptr.vmem [resolvable:$true] %s350_s15 }
  0x2b   : > { %s624_s20 = sshra.s32 %s353_s16, 4  ;;  %s630_s12 = scalar_lea.hbm %s857_s2, 2  ;;  %s625_s20 = int_to_ptr.hbm [resolvable:$true] %s624_s20 }
  0x2c   : > { %v271_v7 = vmax.f32 %v266_v6, %v464_v5  ;;  %vm257_vm0 = vcmp.eq.s32.totalorder %v255_v22, 0  ;;  %vm262_vm1 = vcmp.eq.s32.totalorder %v255_v22, 1  ;;  %vm267_vm2 = vcmp.eq.s32.totalorder %v255_v22, 2  ;;  %s626_s26 = scalar_lea.hbm %s625_s20, 1  ;;  %p631_p7 = scmp.lt.s32.totalorder %s625_s20, %s857_s2 }
  0x2d   : > { %v258_v25 = vsel %vm257_vm0, %v256_v1, 0.0  ;;  %vm272_vm3 = vcmp.eq.s32.totalorder %v255_v22, 3  ;;  %p627_p4 = scmp.ne.s32.totalorder %s625_s20, %s626_s26  ;;  %p632_p8 = scmp.lt.s32.totalorder %s630_s12, %s626_s26 }
  0x2e   : > { %v274_v8 = vsub.f32 %v256_v1, %v271_v7  ;;  %v280_v9 = vsub.f32 %v462_v2, %v271_v7  ;;  %v286_v10 = vsub.f32 %v463_v4, %v271_v7  ;;  %v292_v11 = vsub.f32 %v464_v5, %v271_v7 }
  0x2f   : > { %v263_v28 = vsel %vm262_vm1, %v462_v2, %v258_v25  ;;  %v320_v53 = vld [vmem:[#allocation2] sm:$0x3]  ;;  %p628_p5 = pnand %p627_p4, %p767_p9  ;;  %p633_p10 = por %p632_p8, %p631_p7 }
  0x30   : > { %v275_v12 = vmul.f32 1.442695, %v274_v8  ;;  %v281_v13 = vmul.f32 1.442695, %v280_v9  ;;  %v287_v14 = vmul.f32 1.442695, %v286_v10  ;;  %v268_v33 = vsel %vm267_vm2, %v463_v4, %v263_v28 }
  0x31   : > { %v293_v15 = vmul.f32 1.442695, %v292_v11  ;;  %v273_v41 = vsel %vm272_vm3, %v464_v5, %v268_v33  ;;  %p629_p6 = pneg %p628_p5 }
  0x32   : > { %538 = vpow2.f32 %v275_v12  ;;  %v312_v46 = vsub.f32 %v271_v7, %v273_v41 }
  0x33   : > { %540 = vpow2.f32 %v281_v13  ;;  %p634_p13 = pnand %p633_p10, %p629_p6 }
  0x34   : > { %542 = vpow2.f32 %v287_v14 }
  0x35   : > { %544 = vpow2.f32 %v293_v15 }
  0x38   : > { %v539_v16 = vpop.eup %538 }
  0x39   : > { %v541_v18 = vpop.eup %540  ;;  %v278_v26 = vmul.f32 %v539_v16, %v539_v16 }
  0x3a   : > { %v543_v19 = vpop.eup %542  ;;  %v283_v20 = vadd.f32 %v541_v18, %v539_v16  ;;  %v284_v27 = vmul.f32 %v541_v18, %v541_v18 }
  0x3b   : > { %v545_v21 = vpop.eup %544  ;;  %v290_v31 = vmul.f32 %v543_v19, %v543_v19 }
  0x3c   : > { %v289_v23 = vadd.f32 %v543_v19, %v283_v20  ;;  %v285_v30 = vadd.f32 %v284_v27, %v278_v26  ;;  %v296_v38 = vmul.f32 %v545_v21, %v545_v21 }
  0x3e   : > { %v295_v24 = vadd.f32 %v545_v21, %v289_v23  ;;  %v291_v37 = vadd.f32 %v290_v31, %v285_v30 }
  0x40   : > { %546 = vrcp.f32 %v295_v24  ;;  %v309_v34 = vand.u32 2147483648, %v295_v24  ;;  %vm303_vm4 = vweird.f32 %v295_v24  ;;  %v307_v36 = vand.u32 2147483647, %v295_v24 }
  0x41   : > { %548 = vlog2.f32 %v295_v24  ;;  %v297_v44 = vadd.f32 %v296_v38, %v291_v37 }
  0x42   : > { %v310_v42 = vor.u32 1.1754944e-38, %v309_v34  ;;  %vm308_vm7 = vcmp.eq.f32.partialorder %v307_v36, 8.507059e+37 }
  0x46   : > { %v547_v29 = vpop.eup %546 }
  0x47   : > { %v299_v32 = vmul.f32 %v547_v29, %v295_v24  ;;  %vm304_vm5 = vweird.f32 %v547_v29  ;;  %v549_v40 = vpop.eup %548 }
  0x48   : > { %vm305_vm6 = vmor %vm303_vm4, %vm304_vm5  ;;  %v314_v47 = vmul.f32 0.6931472, %v549_v40 }
  0x49   : > { %v300_v35 = vsub.f32 1.0, %v299_v32 }
  0x4a   : > { %v315_v50 = vadd.f32 %v314_v47, %v312_v46 }
  0x4b   : > { %v301_v39 = vmul.f32 %v547_v29, %v300_v35 }
  0x4d   : > { %v302_v43 = vadd.f32 %v547_v29, %v301_v39 }
  0x4f   : > { %v306_v45 = vsel %vm305_vm6, %v547_v29, %v302_v43 }
  0x50   : > { %v311_v48 = vsel %vm308_vm7, %v310_v42, %v306_v45 }
  0x51   : > { %v316_v49 = vmul.f32 %v311_v48, %v311_v48 }
  0x53   : > { %v317_v51 = vmul.f32 %v316_v49, %v297_v44 }
  0x55   : > { %v318_v52 = vadd.f32 2.0, %v317_v51 }
  0x57   : > { %v319_v54 = vmul.f32 %v318_v52, %v315_v50 }
  0x59   : > { %v322_v55 = vadd.f32 %v320_v53, %v319_v54 }
  0x5b   : > { %323 = vst [vmem:[#allocation2] sm:$0x3] %v322_v55 }
  0x62   : > { %v327_v56 = vld [vmem:[#allocation2] sm:$0x3] }
  0x63   : > { %v329_v57 = vsel %vm328_vm8, %v327_v56, 0.0 }
  0x64   : > { %v330_v58 = vrot.slane %v329_v57, 4 }
  0x66   : > { %v331_v59 = vadd.f32 %v330_v58, %v329_v57 }
  0x68   : > { %v332_v60 = vrot.slane %v331_v59, 2 }
  0x6a   : > { %v333_v61 = vadd.f32 %v332_v60, %v331_v59 }
  0x6c   : > { %v334_v62 = vrot.slane %v333_v61, 1 }
  0x6e   : > { %v335_v63 = vadd.f32 %v334_v62, %v333_v61 }
  0x70   : > { %336 = vst [vmem:[%s242_s8] sm:$0x1] %v335_v63 }
  0x71   : > { %637 = shalt.err (!%p634_p13)
}
  0x72   : > { %472 = dma.vmem_to_hbm [thread:$0]  (%p767_p9), %s351_s15, 16, %s353_s16, %s338_s18  }
  0x73 PF: > { %s364_s29 = sand.u32 1, %s676_s9   ;;  %p482_p0 = pnand %p456_p12, %p774_p11 }
  0x74   : > { %s365_s3 = scalar_lea.sflag [#allocation5], %s364_s29 }
  0x75   : > { %p483_p1 = pneg %p482_p0 }
  0x77   : > { %671 = dma.done.wait (%p483_p1), %s365_s3, 16  }
  0x78   : > { %673 = vsyncadd (%p483_p1), %s365_s3, 4294967280  ;;  %s21_s14 = sadd.s32 1, %s696_s14   ;;  %s863_s9 = smov %s680_s10 }
  0x79   : > { %p18_p2 = scmp.ge.s32.totalorder %s21_s14, 4   ;;  %s864_s10 = smov %s684_s11 }
  0x7a   : > { %s865_s11 = smov %s772_s23  ;;  %s866_s12 = smov %s692_s13 }
  0x7b   : > { %s867_s13 = smov %s869_s17  ;;  %20 = sbr.rel (!%p18_p2) target bundleno = 8 (0x8), region = 97 }
  0x80   :  { %370 = vsyncpa [#allocation4], 1 }
  0x81   :  { %372 = vsyncpa [#allocation4 + $0x1], 1 }
  0x82   :  { %373 = vsyncpa [#allocation7], 1 }
  0x83   :  { %375 = vsyncpa [#allocation7 + $0x1], 1 }
  0x84   :  { %376 = vsyncpa [#allocation5], 1 }
  0x85   :  { %378 = vsyncpa [#allocation5 + $0x1], 1 }

</bundles_post_ra>
